<compile_context>
chip_gen: v7x
topology: tpu7x:2x2x1
jax: 0.10.0
libtpu: 0.0.40
codegen_flags: <defaults>
</compile_context>

<pallas_src>
import functools
import math

import jax
import jax.numpy as jnp
from jax.experimental import pallas as pl
from jax.experimental.pallas import tpu as pltpu


_NEG_INF = -1e30          # finite large negative -> NaN-safe causal masking
_MXU_TILE_TARGET = 256    # v6e/v7x MXUs are 2x256x256 (128-multiples suffice on v5e)


def _choose_tile(dim, target=_MXU_TILE_TARGET):
    """Largest divisor of `dim` that divides `target` (multiple of 8 when dim is)."""
    return math.gcd(dim, target)


def _vmem_limit(est_bytes):
    """Scoped-VMEM budget: 2x slack over the estimated live bytes, at least the
    32 MiB default, never above v5e/v6e's 128 MiB physical VMEM.  The tile
    sizes chosen below keep actual usage well inside v7x's 64 MiB per-TC VMEM."""
    return int(min(128 * 1024 * 1024, max(2 * est_bytes, 32 * 1024 * 1024)))


def _const_block_spec(block_shape, index_map):
    """BlockSpec for grid-constant operands (weights / biases): request
    single-buffering so only ONE copy lives in VMEM (v7x headroom; harmless on
    v5e/v6e).  Falls back to a default spec if this JAX version lacks
    pipeline_mode / pl.Buffered."""
    try:
        return pl.BlockSpec(block_shape, index_map, pipeline_mode=pl.Buffered(1))
    except Exception:
        return pl.BlockSpec(block_shape, index_map)


# ---------------------------------------------------------------------------
# Kernel 1: fused QKV projection, head-major output layout.
# ---------------------------------------------------------------------------
def _qkv_proj_kernel(x_ref, wq_ref, wk_ref, wv_ref, bq_ref, bk_ref, bv_ref,
                     q_ref, k_ref, v_ref, *, n_head):
    # x_ref : (1, tm, C)    activations (compute dtype)
    # w*_ref: (nh, C, hd)   per-head weights (1/sqrt(hd) folded into wq)
    # b*_ref: (nh, 1, hd)   per-head biases, f32
    # q/k/v : (1, nh, tm, hd) head-major outputs (compute dtype)
    x = x_ref[0]
    for h in range(n_head):  # static unroll; n_head is small (<= 16)
        q = jnp.dot(x, wq_ref[h], preferred_element_type=jnp.float32) + bq_ref[h]
        k = jnp.dot(x, wk_ref[h], preferred_element_type=jnp.float32) + bk_ref[h]
        v = jnp.dot(x, wv_ref[h], preferred_element_type=jnp.float32) + bv_ref[h]
        q_ref[0, h] = q.astype(q_ref.dtype)
        k_ref[0, h] = k.astype(k_ref.dtype)
        v_ref[0, h] = v.astype(v_ref.dtype)


# ---------------------------------------------------------------------------
# Kernel 2: flash (online-softmax) causal attention + fused output projection.
# ---------------------------------------------------------------------------
def _flash_attn_proj_kernel(q_ref, k_ref, v_ref, wp_ref, bp_ref, o_ref,
                            *, n_head, tk):
    # q_ref : (1, nh, tq, hd)  pre-scaled queries of this q tile (compute dtype)
    # k_ref : (1, nh, T,  hd)  all keys of this batch element (compute dtype)
    # v_ref : (1, nh, T,  hd)  all values
    # wp_ref: (nh, hd, C)      per-head output-projection weights
    # bp_ref: (1, C)           output-projection bias, f32
    # o_ref : (1, tq, C)
    qi = pl.program_id(1)
    tq, hd = q_ref.shape[2], q_ref.shape[3]
    cdt = k_ref.dtype

    # (tq, tk) causal mask for the DIAGONAL tile only — no head axis, no (T, T).
    # tq == tk, so local row >= col is exactly the global causal condition there.
    row = jax.lax.broadcasted_iota(jnp.int32, (tq, tk), 0)
    col = jax.lax.broadcasted_iota(jnp.int32, (tq, tk), 1)
    diag_mask = row >= col

    out_acc = jnp.zeros((tq, o_ref.shape[-1]), jnp.float32)

    for h in range(n_head):  # static unroll
        q_h = q_ref[0, h]                                   # (tq, hd), scale folded in

        def _accum(carry, k_j, v_j, masked):
            m, l, acc = carry
            s = jax.lax.dot_general(                         # (tq, tk) f32 scores
                q_h, k_j, (((1,), (1,)), ((), ())),
                preferred_element_type=jnp.float32)
            if masked:                                       # diagonal tile only
                s = jnp.where(diag_mask, s, _NEG_INF)
            m_new = jnp.maximum(m, jnp.max(s, axis=-1, keepdims=True))
            alpha = jnp.exp(m - m_new)
            p = jnp.exp(s - m_new)                           # unnormalized probs
            l_new = alpha * l + jnp.sum(p, axis=-1, keepdims=True)
            pv = jax.lax.dot_general(                        # (tq, hd) f32
                p.astype(cdt), v_j, (((1,), (0,)), ((), ())),
                preferred_element_type=jnp.float32)
            return m_new, l_new, alpha * acc + pv

        def _kv_step(j, carry):
            off = pl.multiple_of(j * tk, tk)
            k_j = k_ref[0, h, pl.ds(off, tk), :]
            v_j = v_ref[0, h, pl.ds(off, tk), :]
            return _accum(carry, k_j, v_j, masked=False)

        carry0 = (jnp.full((tq, 1), _NEG_INF, jnp.float32),  # running max
                  jnp.zeros((tq, 1), jnp.float32),           # running denom
                  jnp.zeros((tq, hd), jnp.float32))          # running p @ v

        # Strictly-below-diagonal kv tiles: unmasked, causal skip via bound qi.
        m, l, acc = jax.lax.fori_loop(0, qi, _kv_step, carry0)

        # Diagonal tile: the only one that needs the causal mask.
        off = pl.multiple_of(qi * tk, tk)
        k_d = k_ref[0, h, pl.ds(off, tk), :]
        v_d = v_ref[0, h, pl.ds(off, tk), :]
        m, l, acc = _accum((m, l, acc), k_d, v_d, masked=True)

        # Post-PV normalization: tq*hd divides instead of tq*tk-per-tile work.
        # (pl.reciprocal(l, approx=True) is a valid inference-time swap-in.)
        y_h = (acc / l).astype(cdt)                          # (tq, hd)

        # Fused output projection, accumulated per head (no head-concat relayout).
        out_acc = out_acc + jnp.dot(y_h, wp_ref[h],
                                    preferred_element_type=jnp.float32)

    o_ref[0] = (out_acc + bp_ref[...]).astype(o_ref.dtype)


# ---------------------------------------------------------------------------
# One-time parameter preparation (keep OUT of the per-forward path).
# ---------------------------------------------------------------------------
def prepare_params(w_attn, b_attn, w_proj, b_proj, n_head,
                   compute_dtype=jnp.bfloat16):
    """Split the fused qkv weight into per-head blocks in `x @ W` layout,
    fold 1/sqrt(hd) into Wq/bq, store the projection weight per head, and cast
    the MXU operands to `compute_dtype`.  Biases stay f32 (added post-accum)."""
    three_c, C = w_attn.shape
    assert three_c == 3 * C and C % n_head == 0
    hd = C // n_head
    scale = 1.0 / math.sqrt(hd)

    def to_heads_in(w):  # PyTorch (C_out, C_in) -> (nh, C_in, hd)
        return jnp.transpose(w).reshape(C, n_head, hd).transpose(1, 0, 2)

    wq = to_heads_in(w_attn[:C]) * scale
    wk = to_heads_in(w_attn[C:2 * C])
    wv = to_heads_in(w_attn[2 * C:])
    wp = jnp.transpose(w_proj).reshape(n_head, hd, C)        # (nh, hd, C_out)

    bq = (b_attn[:C] * scale).reshape(n_head, 1, hd).astype(jnp.float32)
    bk = b_attn[C:2 * C].reshape(n_head, 1, hd).astype(jnp.float32)
    bv = b_attn[2 * C:].reshape(n_head, 1, hd).astype(jnp.float32)
    bp = b_proj.reshape(1, C).astype(jnp.float32)

    cast = lambda w: w.astype(compute_dtype)
    return (cast(wq), cast(wk), cast(wv), cast(wp), bq, bk, bv, bp)


# ---------------------------------------------------------------------------
# Forward wrapper.
# ---------------------------------------------------------------------------
def causal_self_attention(x, params, n_head):
    """x: (B, T, C).  params: output of prepare_params(...)."""
    B, T, C = x.shape
    assert C % n_head == 0
    assert T % 8 == 0, "T must be a multiple of 8"  # TODO(synk): pad ragged T
    hd = C // n_head
    wq, wk, wv, wp, bq, bk, bv, bp = params
    cdt = wq.dtype
    cd = jnp.dtype(cdt).itemsize

    # Tile sizes: 256-multiples keep v6e/v7x's 256x256 MXUs filled on the
    # non-contracting dims; gcd keeps small/demo shapes exact.  tq == tk so the
    # causal boundary is exactly one masked diagonal tile per q tile.
    tm = _choose_tile(T)           # rows per projection step
    tq = tk = _choose_tile(T)      # flash q / kv tiles

    xc = x.astype(cdt)             # halves activation DMA on the bf16 path

    # ---- kernel 1: QKV projection -----------------------------------------
    est1 = (2 * tm * C * cd                       # x block (double-buffered)
            + 3 * C * C * cd + 3 * C * 4          # weights + biases (single)
            + 2 * 3 * n_head * tm * hd * cd       # q/k/v output blocks
            + 4 * tm * C * 4)                     # in-kernel f32 temporaries
    q, k, v = pl.pallas_call(
        functools.partial(_qkv_proj_kernel, n_head=n_head),
        grid=(B, T // tm),
        in_specs=[
            pl.BlockSpec((1, tm, C), lambda b, i: (b, i, 0)),
            _const_block_spec((n_head, C, hd), lambda b, i: (0, 0, 0)),
            _const_block_spec((n_head, C, hd), lambda b, i: (0, 0, 0)),
            _const_block_spec((n_head, C, hd), lambda b, i: (0, 0, 0)),
            _const_block_spec((n_head, 1, hd), lambda b, i: (0, 0, 0)),
            _const_block_spec((n_head, 1, hd), lambda b, i: (0, 0, 0)),
            _const_block_spec((n_head, 1, hd), lambda b, i: (0, 0, 0)),
        ],
        out_specs=[
            pl.BlockSpec((1, n_head, tm, hd), lambda b, i: (b, 0, i, 0)),
            pl.BlockSpec((1, n_head, tm, hd), lambda b, i: (b, 0, i, 0)),
            pl.BlockSpec((1, n_head, tm, hd), lambda b, i: (b, 0, i, 0)),
        ],
        out_shape=[jax.ShapeDtypeStruct((B, n_head, T, hd), cdt)] * 3,
        compiler_params=pltpu.CompilerParams(
            dimension_semantics=("parallel", "parallel"),
            vmem_limit_bytes=_vmem_limit(est1)),
    )(xc, wq, wk, wv, bq, bk, bv)

    # ---- kernel 2: flash causal attention + output projection --------------
    est2 = (2 * n_head * tq * hd * cd             # q tile (double-buffered)
            + 2 * 2 * n_head * T * hd * cd        # resident K, V blocks
            + C * C * cd + C * 4                  # wp + bp (single-buffered)
            + 2 * tq * C * x.dtype.itemsize       # output block
            + (3 * tq * tk + 2 * tq * C + 2 * tq * hd + 4 * tq) * 4)  # temps
    out = pl.pallas_call(
        functools.partial(_flash_attn_proj_kernel, n_head=n_head, tk=tk),
        grid=(B, T // tq),
        in_specs=[
            pl.BlockSpec((1, n_head, tq, hd), lambda b, i: (b, 0, i, 0)),
            pl.BlockSpec((1, n_head, T, hd), lambda b, i: (b, 0, 0, 0)),
            pl.BlockSpec((1, n_head, T, hd), lambda b, i: (b, 0, 0, 0)),
            _const_block_spec((n_head, hd, C), lambda b, i: (0, 0, 0)),
            _const_block_spec((1, C), lambda b, i: (0, 0)),
        ],
        out_specs=pl.BlockSpec((1, tq, C), lambda b, i: (b, i, 0)),
        out_shape=jax.ShapeDtypeStruct((B, T, C), x.dtype),
        compiler_params=pltpu.CompilerParams(
            dimension_semantics=("parallel", "parallel"),
            vmem_limit_bytes=_vmem_limit(est2)),
    )(q, k, v, wp, bp)
    return out


# ---------------------------------------------------------------------------
# Pure-JAX reference (mirrors the PyTorch forward), HIGHEST matmul precision.
# ---------------------------------------------------------------------------
def _reference(x, w_attn, b_attn, w_proj, b_proj, n_head):
    B, T, C = x.shape
    hd = C // n_head
    hi = jax.lax.Precision.HIGHEST
    qkv = jnp.einsum("btc,oc->bto", x, w_attn, precision=hi) + b_attn
    q, k, v = jnp.split(qkv, 3, axis=2)

    def heads(t):  # (B, T, C) -> (B, nh, T, hd)
        return jnp.transpose(t.reshape(B, T, n_head, hd), (0, 2, 1, 3))

    q, k, v = heads(q), heads(k), heads(v)
    s = jnp.einsum("bhqd,bhkd->bhqk", q, k, precision=hi) / math.sqrt(hd)
    mask = jnp.tril(jnp.ones((T, T), dtype=bool))
    s = jnp.where(mask, s, -jnp.inf)
    p = jax.nn.softmax(s, axis=-1)
    y = jnp.einsum("bhqk,bhkd->bhqd", p, v, precision=hi)
    y = jnp.transpose(y, (0, 2, 1, 3)).reshape(B, T, C)
    return jnp.einsum("btc,oc->bto", y, w_proj, precision=hi) + b_proj


if __name__ == "__main__":
    # config: n_embd=32, n_head=4 -> head_dim=8 ; batch=2, seq=8
    B, T, C, n_head = 2, 8, 32, 4

    key = jax.random.PRNGKey(0)
    kx, k1, k2, k3, k4 = jax.random.split(key, 5)

    x = jax.random.normal(kx, (B, T, C), dtype=jnp.float32)
    w_attn = jax.random.normal(k1, (3 * C, C), dtype=jnp.float32) * (1.0 / math.sqrt(C))
    b_attn = jax.random.normal(k2, (3 * C,), dtype=jnp.float32) * 0.02
    w_proj = jax.random.normal(k3, (C, C), dtype=jnp.float32) * (1.0 / math.sqrt(C))
    b_proj = jax.random.normal(k4, (C,), dtype=jnp.float32) * 0.02

    ref = _reference(x, w_attn, b_attn, w_proj, b_proj, n_head)

    # f32-operand path: structural check.  Tolerance allows the MXU's default
    # f32 operand pass-through on real hardware; real bugs give O(1) errors.
    params_f32 = prepare_params(w_attn, b_attn, w_proj, b_proj, n_head,
                                compute_dtype=jnp.float32)
    out_f32 = jax.block_until_ready(causal_self_attention(x, params_f32, n_head))
    assert out_f32.shape == (B, T, C)
    assert jnp.allclose(out_f32, ref, atol=5e-2, rtol=5e-2), (
        f"f32 path mismatch (max abs err {jnp.max(jnp.abs(out_f32 - ref))})")

    # bf16-MXU-operand path (the performance configuration): operands rounded
    # to bf16, accumulation and softmax statistics stay f32.
    params_bf16 = prepare_params(w_attn, b_attn, w_proj, b_proj, n_head,
                                 compute_dtype=jnp.bfloat16)
    out_bf16 = jax.block_until_ready(causal_self_attention(x, params_bf16, n_head))
    assert out_bf16.shape == (B, T, C)
    assert jnp.allclose(out_bf16, ref, atol=1e-1, rtol=1e-1), (
        f"bf16 path mismatch (max abs err {jnp.max(jnp.abs(out_bf16 - ref))})")

    print("KERNEL_OK")
</pallas_src>

<mosaic_0001>
module attributes {stable_mosaic.version = 11 : i64} {
  func.func @_qkv_proj_kernel(%arg0: i32, %arg1: i32, %arg2: memref<1x8x32xf32, #tpu.memory_space<vmem>>, %arg3: memref<4x32x8xf32, #tpu.memory_space<vmem>>, %arg4: memref<4x32x8xf32, #tpu.memory_space<vmem>>, %arg5: memref<4x32x8xf32, #tpu.memory_space<vmem>>, %arg6: memref<4x1x8xf32, #tpu.memory_space<vmem>>, %arg7: memref<4x1x8xf32, #tpu.memory_space<vmem>>, %arg8: memref<4x1x8xf32, #tpu.memory_space<vmem>>, %arg9: memref<1x4x8x8xf32, #tpu.memory_space<vmem>>, %arg10: memref<1x4x8x8xf32, #tpu.memory_space<vmem>>, %arg11: memref<1x4x8x8xf32, #tpu.memory_space<vmem>>) attributes {dimension_semantics = [#tpu.dimension_semantics<parallel>, #tpu.dimension_semantics<parallel>], iteration_bounds = array<i64: 2, 1>, scalar_prefetch = 0 : i64, scratch_operands = 0 : i64, tpu.core_type = #tpu.core_type<tc>, window_params = [{transform_indices = @transform_0, window_bounds = array<i64: 1, 8, 32>}, {pipeline_mode = #tpu.pipeline_mode<synchronous>, transform_indices = @transform_1, window_bounds = array<i64: 4, 32, 8>}, {pipeline_mode = #tpu.pipeline_mode<synchronous>, transform_indices = @transform_2, window_bounds = array<i64: 4, 32, 8>}, {pipeline_mode = #tpu.pipeline_mode<synchronous>, transform_indices = @transform_3, window_bounds = array<i64: 4, 32, 8>}, {pipeline_mode = #tpu.pipeline_mode<synchronous>, transform_indices = @transform_4, window_bounds = array<i64: 4, 1, 8>}, {pipeline_mode = #tpu.pipeline_mode<synchronous>, transform_indices = @transform_5, window_bounds = array<i64: 4, 1, 8>}, {pipeline_mode = #tpu.pipeline_mode<synchronous>, transform_indices = @transform_6, window_bounds = array<i64: 4, 1, 8>}, {transform_indices = @transform_7, window_bounds = array<i64: 1, 4, 8, 8>}, {transform_indices = @transform_8, window_bounds = array<i64: 1, 4, 8, 8>}, {transform_indices = @transform_9, window_bounds = array<i64: 1, 4, 8, 8>}]} {
    %c0 = arith.constant 0 : index
    %c0_0 = arith.constant 0 : index
    %c0_1 = arith.constant 0 : index
    %0 = vector.load %arg2[%c0, %c0_0, %c0_1] : memref<1x8x32xf32, #tpu.memory_space<vmem>>, vector<1x8x32xf32>
    %1 = vector.shape_cast %0 : vector<1x8x32xf32> to vector<8x32xf32>
    %c0_2 = arith.constant 0 : index
    %c0_3 = arith.constant 0 : index
    %c0_4 = arith.constant 0 : index
    %2 = vector.load %arg3[%c0_2, %c0_3, %c0_4] : memref<4x32x8xf32, #tpu.memory_space<vmem>>, vector<1x32x8xf32>
    %3 = vector.shape_cast %2 : vector<1x32x8xf32> to vector<32x8xf32>
    %cst = arith.constant dense<0.000000e+00> : vector<8x8xf32>
    %4 = tpu.matmul %1, %3, %cst {dimension_numbers = #tpu.dot_dimension_numbers<[1], [0], [0], [1], [0, 0, 1, 1], [], []>} : vector<8x32xf32>, vector<32x8xf32>, vector<8x8xf32> -> vector<8x8xf32>
    %c0_5 = arith.constant 0 : index
    %c0_6 = arith.constant 0 : index
    %c0_7 = arith.constant 0 : index
    %5 = vector.load %arg6[%c0_5, %c0_6, %c0_7] : memref<4x1x8xf32, #tpu.memory_space<vmem>>, vector<1x1x8xf32>
    %6 = vector.shape_cast %5 : vector<1x1x8xf32> to vector<1x8xf32>
    %7 = vector.broadcast %6 : vector<1x8xf32> to vector<8x8xf32>
    %8 = arith.addf %4, %7 : vector<8x8xf32>
    %c0_8 = arith.constant 0 : index
    %c0_9 = arith.constant 0 : index
    %c0_10 = arith.constant 0 : index
    %9 = vector.load %arg4[%c0_8, %c0_9, %c0_10] : memref<4x32x8xf32, #tpu.memory_space<vmem>>, vector<1x32x8xf32>
    %10 = vector.shape_cast %9 : vector<1x32x8xf32> to vector<32x8xf32>
    %cst_11 = arith.constant dense<0.000000e+00> : vector<8x8xf32>
    %11 = tpu.matmul %1, %10, %cst_11 {dimension_numbers = #tpu.dot_dimension_numbers<[1], [0], [0], [1], [0, 0, 1, 1], [], []>} : vector<8x32xf32>, vector<32x8xf32>, vector<8x8xf32> -> vector<8x8xf32>
    %c0_12 = arith.constant 0 : index
    %c0_13 = arith.constant 0 : index
    %c0_14 = arith.constant 0 : index
    %12 = vector.load %arg7[%c0_12, %c0_13, %c0_14] : memref<4x1x8xf32, #tpu.memory_space<vmem>>, vector<1x1x8xf32>
    %13 = vector.shape_cast %12 : vector<1x1x8xf32> to vector<1x8xf32>
    %14 = vector.broadcast %13 : vector<1x8xf32> to vector<8x8xf32>
    %15 = arith.addf %11, %14 : vector<8x8xf32>
    %c0_15 = arith.constant 0 : index
    %c0_16 = arith.constant 0 : index
    %c0_17 = arith.constant 0 : index
    %16 = vector.load %arg5[%c0_15, %c0_16, %c0_17] : memref<4x32x8xf32, #tpu.memory_space<vmem>>, vector<1x32x8xf32>
    %17 = vector.shape_cast %16 : vector<1x32x8xf32> to vector<32x8xf32>
    %cst_18 = arith.constant dense<0.000000e+00> : vector<8x8xf32>
    %18 = tpu.matmul %1, %17, %cst_18 {dimension_numbers = #tpu.dot_dimension_numbers<[1], [0], [0], [1], [0, 0, 1, 1], [], []>} : vector<8x32xf32>, vector<32x8xf32>, vector<8x8xf32> -> vector<8x8xf32>
    %c0_19 = arith.constant 0 : index
    %c0_20 = arith.constant 0 : index
    %c0_21 = arith.constant 0 : index
    %19 = vector.load %arg8[%c0_19, %c0_20, %c0_21] : memref<4x1x8xf32, #tpu.memory_space<vmem>>, vector<1x1x8xf32>
    %20 = vector.shape_cast %19 : vector<1x1x8xf32> to vector<1x8xf32>
    %21 = vector.broadcast %20 : vector<1x8xf32> to vector<8x8xf32>
    %22 = arith.addf %18, %21 : vector<8x8xf32>
    %c0_22 = arith.constant 0 : index
    %c0_23 = arith.constant 0 : index
    %c0_24 = arith.constant 0 : index
    %c0_25 = arith.constant 0 : index
    %23 = vector.load %arg9[%c0_22, %c0_23, %c0_24, %c0_25] : memref<1x4x8x8xf32, #tpu.memory_space<vmem>>, vector<1x1x8x8xf32>
    %24 = vector.shape_cast %23 : vector<1x1x8x8xf32> to vector<8x8xf32>
    %25 = vector.shape_cast %8 : vector<8x8xf32> to vector<1x1x8x8xf32>
    tpu.vector_store %arg9[%c0_22, %c0_23, %c0_24, %c0_25], %25 {strides = array<i32>} : memref<1x4x8x8xf32, #tpu.memory_space<vmem>>, vector<1x1x8x8xf32>,
    %c0_26 = arith.constant 0 : index
    %c0_27 = arith.constant 0 : index
    %c0_28 = arith.constant 0 : index
    %c0_29 = arith.constant 0 : index
    %26 = vector.load %arg10[%c0_26, %c0_27, %c0_28, %c0_29] : memref<1x4x8x8xf32, #tpu.memory_space<vmem>>, vector<1x1x8x8xf32>
    %27 = vector.shape_cast %26 : vector<1x1x8x8xf32> to vector<8x8xf32>
    %28 = vector.shape_cast %15 : vector<8x8xf32> to vector<1x1x8x8xf32>
    tpu.vector_store %arg10[%c0_26, %c0_27, %c0_28, %c0_29], %28 {strides = array<i32>} : memref<1x4x8x8xf32, #tpu.memory_space<vmem>>, vector<1x1x8x8xf32>,
    %c0_30 = arith.constant 0 : index
    %c0_31 = arith.constant 0 : index
    %c0_32 = arith.constant 0 : index
    %c0_33 = arith.constant 0 : index
    %29 = vector.load %arg11[%c0_30, %c0_31, %c0_32, %c0_33] : memref<1x4x8x8xf32, #tpu.memory_space<vmem>>, vector<1x1x8x8xf32>
    %30 = vector.shape_cast %29 : vector<1x1x8x8xf32> to vector<8x8xf32>
    %31 = vector.shape_cast %22 : vector<8x8xf32> to vector<1x1x8x8xf32>
    tpu.vector_store %arg11[%c0_30, %c0_31, %c0_32, %c0_33], %31 {strides = array<i32>} : memref<1x4x8x8xf32, #tpu.memory_space<vmem>>, vector<1x1x8x8xf32>,
    %c1 = arith.constant 1 : index
    %c0_34 = arith.constant 0 : index
    %c0_35 = arith.constant 0 : index
    %32 = vector.load %arg3[%c1, %c0_34, %c0_35] : memref<4x32x8xf32, #tpu.memory_space<vmem>>, vector<1x32x8xf32>
    %33 = vector.shape_cast %32 : vector<1x32x8xf32> to vector<32x8xf32>
    %cst_36 = arith.constant dense<0.000000e+00> : vector<8x8xf32>
    %34 = tpu.matmul %1, %33, %cst_36 {dimension_numbers = #tpu.dot_dimension_numbers<[1], [0], [0], [1], [0, 0, 1, 1], [], []>} : vector<8x32xf32>, vector<32x8xf32>, vector<8x8xf32> -> vector<8x8xf32>
    %c1_37 = arith.constant 1 : index
    %c0_38 = arith.constant 0 : index
    %c0_39 = arith.constant 0 : index
    %35 = vector.load %arg6[%c1_37, %c0_38, %c0_39] : memref<4x1x8xf32, #tpu.memory_space<vmem>>, vector<1x1x8xf32>
    %36 = vector.shape_cast %35 : vector<1x1x8xf32> to vector<1x8xf32>
    %37 = vector.broadcast %36 : vector<1x8xf32> to vector<8x8xf32>
    %38 = arith.addf %34, %37 : vector<8x8xf32>
    %c1_40 = arith.constant 1 : index
    %c0_41 = arith.constant 0 : index
    %c0_42 = arith.constant 0 : index
    %39 = vector.load %arg4[%c1_40, %c0_41, %c0_42] : memref<4x32x8xf32, #tpu.memory_space<vmem>>, vector<1x32x8xf32>
    %40 = vector.shape_cast %39 : vector<1x32x8xf32> to vector<32x8xf32>
    %cst_43 = arith.constant dense<0.000000e+00> : vector<8x8xf32>
    %41 = tpu.matmul %1, %40, %cst_43 {dimension_numbers = #tpu.dot_dimension_numbers<[1], [0], [0], [1], [0, 0, 1, 1], [], []>} : vector<8x32xf32>, vector<32x8xf32>, vector<8x8xf32> -> vector<8x8xf32>
    %c1_44 = arith.constant 1 : index
    %c0_45 = arith.constant 0 : index
    %c0_46 = arith.constant 0 : index
    %42 = vector.load %arg7[%c1_44, %c0_45, %c0_46] : memref<4x1x8xf32, #tpu.memory_space<vmem>>, vector<1x1x8xf32>
    %43 = vector.shape_cast %42 : vector<1x1x8xf32> to vector<1x8xf32>
    %44 = vector.broadcast %43 : vector<1x8xf32> to vector<8x8xf32>
    %45 = arith.addf %41, %44 : vector<8x8xf32>
    %c1_47 = arith.constant 1 : index
    %c0_48 = arith.constant 0 : index
    %c0_49 = arith.constant 0 : index
    %46 = vector.load %arg5[%c1_47, %c0_48, %c0_49] : memref<4x32x8xf32, #tpu.memory_space<vmem>>, vector<1x32x8xf32>
    %47 = vector.shape_cast %46 : vector<1x32x8xf32> to vector<32x8xf32>
    %cst_50 = arith.constant dense<0.000000e+00> : vector<8x8xf32>
    %48 = tpu.matmul %1, %47, %cst_50 {dimension_numbers = #tpu.dot_dimension_numbers<[1], [0], [0], [1], [0, 0, 1, 1], [], []>} : vector<8x32xf32>, vector<32x8xf32>, vector<8x8xf32> -> vector<8x8xf32>
    %c1_51 = arith.constant 1 : index
    %c0_52 = arith.constant 0 : index
    %c0_53 = arith.constant 0 : index
    %49 = vector.load %arg8[%c1_51, %c0_52, %c0_53] : memref<4x1x8xf32, #tpu.memory_space<vmem>>, vector<1x1x8xf32>
    %50 = vector.shape_cast %49 : vector<1x1x8xf32> to vector<1x8xf32>
    %51 = vector.broadcast %50 : vector<1x8xf32> to vector<8x8xf32>
    %52 = arith.addf %48, %51 : vector<8x8xf32>
    %c0_54 = arith.constant 0 : index
    %c1_55 = arith.constant 1 : index
    %c0_56 = arith.constant 0 : index
    %c0_57 = arith.constant 0 : index
    %53 = vector.load %arg9[%c0_54, %c1_55, %c0_56, %c0_57] : memref<1x4x8x8xf32, #tpu.memory_space<vmem>>, vector<1x1x8x8xf32>
    %54 = vector.shape_cast %53 : vector<1x1x8x8xf32> to vector<8x8xf32>
    %55 = vector.shape_cast %38 : vector<8x8xf32> to vector<1x1x8x8xf32>
    tpu.vector_store %arg9[%c0_54, %c1_55, %c0_56, %c0_57], %55 {strides = array<i32>} : memref<1x4x8x8xf32, #tpu.memory_space<vmem>>, vector<1x1x8x8xf32>,
    %c0_58 = arith.constant 0 : index
    %c1_59 = arith.constant 1 : index
    %c0_60 = arith.constant 0 : index
    %c0_61 = arith.constant 0 : index
    %56 = vector.load %arg10[%c0_58, %c1_59, %c0_60, %c0_61] : memref<1x4x8x8xf32, #tpu.memory_space<vmem>>, vector<1x1x8x8xf32>
    %57 = vector.shape_cast %56 : vector<1x1x8x8xf32> to vector<8x8xf32>
    %58 = vector.shape_cast %45 : vector<8x8xf32> to vector<1x1x8x8xf32>
    tpu.vector_store %arg10[%c0_58, %c1_59, %c0_60, %c0_61], %58 {strides = array<i32>} : memref<1x4x8x8xf32, #tpu.memory_space<vmem>>, vector<1x1x8x8xf32>,
    %c0_62 = arith.constant 0 : index
    %c1_63 = arith.constant 1 : index
    %c0_64 = arith.constant 0 : index
    %c0_65 = arith.constant 0 : index
    %59 = vector.load %arg11[%c0_62, %c1_63, %c0_64, %c0_65] : memref<1x4x8x8xf32, #tpu.memory_space<vmem>>, vector<1x1x8x8xf32>
    %60 = vector.shape_cast %59 : vector<1x1x8x8xf32> to vector<8x8xf32>
    %61 = vector.shape_cast %52 : vector<8x8xf32> to vector<1x1x8x8xf32>
    tpu.vector_store %arg11[%c0_62, %c1_63, %c0_64, %c0_65], %61 {strides = array<i32>} : memref<1x4x8x8xf32, #tpu.memory_space<vmem>>, vector<1x1x8x8xf32>,
    %c2 = arith.constant 2 : index
    %c0_66 = arith.constant 0 : index
    %c0_67 = arith.constant 0 : index
    %62 = vector.load %arg3[%c2, %c0_66, %c0_67] : memref<4x32x8xf32, #tpu.memory_space<vmem>>, vector<1x32x8xf32>
    %63 = vector.shape_cast %62 : vector<1x32x8xf32> to vector<32x8xf32>
    %cst_68 = arith.constant dense<0.000000e+00> : vector<8x8xf32>
    %64 = tpu.matmul %1, %63, %cst_68 {dimension_numbers = #tpu.dot_dimension_numbers<[1], [0], [0], [1], [0, 0, 1, 1], [], []>} : vector<8x32xf32>, vector<32x8xf32>, vector<8x8xf32> -> vector<8x8xf32>
    %c2_69 = arith.constant 2 : index
    %c0_70 = arith.constant 0 : index
    %c0_71 = arith.constant 0 : index
    %65 = vector.load %arg6[%c2_69, %c0_70, %c0_71] : memref<4x1x8xf32, #tpu.memory_space<vmem>>, vector<1x1x8xf32>
    %66 = vector.shape_cast %65 : vector<1x1x8xf32> to vector<1x8xf32>
    %67 = vector.broadcast %66 : vector<1x8xf32> to vector<8x8xf32>
    %68 = arith.addf %64, %67 : vector<8x8xf32>
    %c2_72 = arith.constant 2 : index
    %c0_73 = arith.constant 0 : index
    %c0_74 = arith.constant 0 : index
    %69 = vector.load %arg4[%c2_72, %c0_73, %c0_74] : memref<4x32x8xf32, #tpu.memory_space<vmem>>, vector<1x32x8xf32>
    %70 = vector.shape_cast %69 : vector<1x32x8xf32> to vector<32x8xf32>
    %cst_75 = arith.constant dense<0.000000e+00> : vector<8x8xf32>
    %71 = tpu.matmul %1, %70, %cst_75 {dimension_numbers = #tpu.dot_dimension_numbers<[1], [0], [0], [1], [0, 0, 1, 1], [], []>} : vector<8x32xf32>, vector<32x8xf32>, vector<8x8xf32> -> vector<8x8xf32>
    %c2_76 = arith.constant 2 : index
    %c0_77 = arith.constant 0 : index
    %c0_78 = arith.constant 0 : index
    %72 = vector.load %arg7[%c2_76, %c0_77, %c0_78] : memref<4x1x8xf32, #tpu.memory_space<vmem>>, vector<1x1x8xf32>
    %73 = vector.shape_cast %72 : vector<1x1x8xf32> to vector<1x8xf32>
    %74 = vector.broadcast %73 : vector<1x8xf32> to vector<8x8xf32>
    %75 = arith.addf %71, %74 : vector<8x8xf32>
    %c2_79 = arith.constant 2 : index
    %c0_80 = arith.constant 0 : index
    %c0_81 = arith.constant 0 : index
    %76 = vector.load %arg5[%c2_79, %c0_80, %c0_81] : memref<4x32x8xf32, #tpu.memory_space<vmem>>, vector<1x32x8xf32>
    %77 = vector.shape_cast %76 : vector<1x32x8xf32> to vector<32x8xf32>
    %cst_82 = arith.constant dense<0.000000e+00> : vector<8x8xf32>
    %78 = tpu.matmul %1, %77, %cst_82 {dimension_numbers = #tpu.dot_dimension_numbers<[1], [0], [0], [1], [0, 0, 1, 1], [], []>} : vector<8x32xf32>, vector<32x8xf32>, vector<8x8xf32> -> vector<8x8xf32>
    %c2_83 = arith.constant 2 : index
    %c0_84 = arith.constant 0 : index
    %c0_85 = arith.constant 0 : index
    %79 = vector.load %arg8[%c2_83, %c0_84, %c0_85] : memref<4x1x8xf32, #tpu.memory_space<vmem>>, vector<1x1x8xf32>
    %80 = vector.shape_cast %79 : vector<1x1x8xf32> to vector<1x8xf32>
    %81 = vector.broadcast %80 : vector<1x8xf32> to vector<8x8xf32>
    %82 = arith.addf %78, %81 : vector<8x8xf32>
    %c0_86 = arith.constant 0 : index
    %c2_87 = arith.constant 2 : index
    %c0_88 = arith.constant 0 : index
    %c0_89 = arith.constant 0 : index
    %83 = vector.load %arg9[%c0_86, %c2_87, %c0_88, %c0_89] : memref<1x4x8x8xf32, #tpu.memory_space<vmem>>, vector<1x1x8x8xf32>
    %84 = vector.shape_cast %83 : vector<1x1x8x8xf32> to vector<8x8xf32>
    %85 = vector.shape_cast %68 : vector<8x8xf32> to vector<1x1x8x8xf32>
    tpu.vector_store %arg9[%c0_86, %c2_87, %c0_88, %c0_89], %85 {strides = array<i32>} : memref<1x4x8x8xf32, #tpu.memory_space<vmem>>, vector<1x1x8x8xf32>,
    %c0_90 = arith.constant 0 : index
    %c2_91 = arith.constant 2 : index
    %c0_92 = arith.constant 0 : index
    %c0_93 = arith.constant 0 : index
    %86 = vector.load %arg10[%c0_90, %c2_91, %c0_92, %c0_93] : memref<1x4x8x8xf32, #tpu.memory_space<vmem>>, vector<1x1x8x8xf32>
    %87 = vector.shape_cast %86 : vector<1x1x8x8xf32> to vector<8x8xf32>
    %88 = vector.shape_cast %75 : vector<8x8xf32> to vector<1x1x8x8xf32>
    tpu.vector_store %arg10[%c0_90, %c2_91, %c0_92, %c0_93], %88 {strides = array<i32>} : memref<1x4x8x8xf32, #tpu.memory_space<vmem>>, vector<1x1x8x8xf32>,
    %c0_94 = arith.constant 0 : index
    %c2_95 = arith.constant 2 : index
    %c0_96 = arith.constant 0 : index
    %c0_97 = arith.constant 0 : index
    %89 = vector.load %arg11[%c0_94, %c2_95, %c0_96, %c0_97] : memref<1x4x8x8xf32, #tpu.memory_space<vmem>>, vector<1x1x8x8xf32>
    %90 = vector.shape_cast %89 : vector<1x1x8x8xf32> to vector<8x8xf32>
    %91 = vector.shape_cast %82 : vector<8x8xf32> to vector<1x1x8x8xf32>
    tpu.vector_store %arg11[%c0_94, %c2_95, %c0_96, %c0_97], %91 {strides = array<i32>} : memref<1x4x8x8xf32, #tpu.memory_space<vmem>>, vector<1x1x8x8xf32>,
    %c3 = arith.constant 3 : index
    %c0_98 = arith.constant 0 : index
    %c0_99 = arith.constant 0 : index
    %92 = vector.load %arg3[%c3, %c0_98, %c0_99] : memref<4x32x8xf32, #tpu.memory_space<vmem>>, vector<1x32x8xf32>
    %93 = vector.shape_cast %92 : vector<1x32x8xf32> to vector<32x8xf32>
    %cst_100 = arith.constant dense<0.000000e+00> : vector<8x8xf32>
    %94 = tpu.matmul %1, %93, %cst_100 {dimension_numbers = #tpu.dot_dimension_numbers<[1], [0], [0], [1], [0, 0, 1, 1], [], []>} : vector<8x32xf32>, vector<32x8xf32>, vector<8x8xf32> -> vector<8x8xf32>
    %c3_101 = arith.constant 3 : index
    %c0_102 = arith.constant 0 : index
    %c0_103 = arith.constant 0 : index
    %95 = vector.load %arg6[%c3_101, %c0_102, %c0_103] : memref<4x1x8xf32, #tpu.memory_space<vmem>>, vector<1x1x8xf32>
    %96 = vector.shape_cast %95 : vector<1x1x8xf32> to vector<1x8xf32>
    %97 = vector.broadcast %96 : vector<1x8xf32> to vector<8x8xf32>
    %98 = arith.addf %94, %97 : vector<8x8xf32>
    %c3_104 = arith.constant 3 : index
    %c0_105 = arith.constant 0 : index
    %c0_106 = arith.constant 0 : index
    %99 = vector.load %arg4[%c3_104, %c0_105, %c0_106] : memref<4x32x8xf32, #tpu.memory_space<vmem>>, vector<1x32x8xf32>
    %100 = vector.shape_cast %99 : vector<1x32x8xf32> to vector<32x8xf32>
    %cst_107 = arith.constant dense<0.000000e+00> : vector<8x8xf32>
    %101 = tpu.matmul %1, %100, %cst_107 {dimension_numbers = #tpu.dot_dimension_numbers<[1], [0], [0], [1], [0, 0, 1, 1], [], []>} : vector<8x32xf32>, vector<32x8xf32>, vector<8x8xf32> -> vector<8x8xf32>
    %c3_108 = arith.constant 3 : index
    %c0_109 = arith.constant 0 : index
    %c0_110 = arith.constant 0 : index
    %102 = vector.load %arg7[%c3_108, %c0_109, %c0_110] : memref<4x1x8xf32, #tpu.memory_space<vmem>>, vector<1x1x8xf32>
    %103 = vector.shape_cast %102 : vector<1x1x8xf32> to vector<1x8xf32>
    %104 = vector.broadcast %103 : vector<1x8xf32> to vector<8x8xf32>
    %105 = arith.addf %101, %104 : vector<8x8xf32>
    %c3_111 = arith.constant 3 : index
    %c0_112 = arith.constant 0 : index
    %c0_113 = arith.constant 0 : index
    %106 = vector.load %arg5[%c3_111, %c0_112, %c0_113] : memref<4x32x8xf32, #tpu.memory_space<vmem>>, vector<1x32x8xf32>
    %107 = vector.shape_cast %106 : vector<1x32x8xf32> to vector<32x8xf32>
    %cst_114 = arith.constant dense<0.000000e+00> : vector<8x8xf32>
    %108 = tpu.matmul %1, %107, %cst_114 {dimension_numbers = #tpu.dot_dimension_numbers<[1], [0], [0], [1], [0, 0, 1, 1], [], []>} : vector<8x32xf32>, vector<32x8xf32>, vector<8x8xf32> -> vector<8x8xf32>
    %c3_115 = arith.constant 3 : index
    %c0_116 = arith.constant 0 : index
    %c0_117 = arith.constant 0 : index
    %109 = vector.load %arg8[%c3_115, %c0_116, %c0_117] : memref<4x1x8xf32, #tpu.memory_space<vmem>>, vector<1x1x8xf32>
    %110 = vector.shape_cast %109 : vector<1x1x8xf32> to vector<1x8xf32>
    %111 = vector.broadcast %110 : vector<1x8xf32> to vector<8x8xf32>
    %112 = arith.addf %108, %111 : vector<8x8xf32>
    %c0_118 = arith.constant 0 : index
    %c3_119 = arith.constant 3 : index
    %c0_120 = arith.constant 0 : index
    %c0_121 = arith.constant 0 : index
    %113 = vector.load %arg9[%c0_118, %c3_119, %c0_120, %c0_121] : memref<1x4x8x8xf32, #tpu.memory_space<vmem>>, vector<1x1x8x8xf32>
    %114 = vector.shape_cast %113 : vector<1x1x8x8xf32> to vector<8x8xf32>
    %115 = vector.shape_cast %98 : vector<8x8xf32> to vector<1x1x8x8xf32>
    tpu.vector_store %arg9[%c0_118, %c3_119, %c0_120, %c0_121], %115 {strides = array<i32>} : memref<1x4x8x8xf32, #tpu.memory_space<vmem>>, vector<1x1x8x8xf32>,
    %c0_122 = arith.constant 0 : index
    %c3_123 = arith.constant 3 : index
    %c0_124 = arith.constant 0 : index
    %c0_125 = arith.constant 0 : index
    %116 = vector.load %arg10[%c0_122, %c3_123, %c0_124, %c0_125] : memref<1x4x8x8xf32, #tpu.memory_space<vmem>>, vector<1x1x8x8xf32>
    %117 = vector.shape_cast %116 : vector<1x1x8x8xf32> to vector<8x8xf32>
    %118 = vector.shape_cast %105 : vector<8x8xf32> to vector<1x1x8x8xf32>
    tpu.vector_store %arg10[%c0_122, %c3_123, %c0_124, %c0_125], %118 {strides = array<i32>} : memref<1x4x8x8xf32, #tpu.memory_space<vmem>>, vector<1x1x8x8xf32>,
    %c0_126 = arith.constant 0 : index
    %c3_127 = arith.constant 3 : index
    %c0_128 = arith.constant 0 : index
    %c0_129 = arith.constant 0 : index
    %119 = vector.load %arg11[%c0_126, %c3_127, %c0_128, %c0_129] : memref<1x4x8x8xf32, #tpu.memory_space<vmem>>, vector<1x1x8x8xf32>
    %120 = vector.shape_cast %119 : vector<1x1x8x8xf32> to vector<8x8xf32>
    %121 = vector.shape_cast %112 : vector<8x8xf32> to vector<1x1x8x8xf32>
    tpu.vector_store %arg11[%c0_126, %c3_127, %c0_128, %c0_129], %121 {strides = array<i32>} : memref<1x4x8x8xf32, #tpu.memory_space<vmem>>, vector<1x1x8x8xf32>,
    return
  }
  func.func @transform_0(%arg0: i32, %arg1: i32) -> (i32, i32, i32) {
    %c0_i32 = arith.constant 0 : i32
    %c0_i32_0 = arith.constant 0 : i32
    return %arg0, %arg1, %c0_i32 : i32, i32, i32
  }
  func.func @transform_1(%arg0: i32, %arg1: i32) -> (i32, i32, i32) {
    %c0_i32 = arith.constant 0 : i32
    %c0_i32_0 = arith.constant 0 : i32
    %c0_i32_1 = arith.constant 0 : i32
    %c0_i32_2 = arith.constant 0 : i32
    return %c0_i32, %c0_i32_0, %c0_i32_1 : i32, i32, i32
  }
  func.func @transform_2(%arg0: i32, %arg1: i32) -> (i32, i32, i32) {
    %c0_i32 = arith.constant 0 : i32
    %c0_i32_0 = arith.constant 0 : i32
    %c0_i32_1 = arith.constant 0 : i32
    %c0_i32_2 = arith.constant 0 : i32
    return %c0_i32, %c0_i32_0, %c0_i32_1 : i32, i32, i32
  }
  func.func @transform_3(%arg0: i32, %arg1: i32) -> (i32, i32, i32) {
    %c0_i32 = arith.constant 0 : i32
    %c0_i32_0 = arith.constant 0 : i32
    %c0_i32_1 = arith.constant 0 : i32
    %c0_i32_2 = arith.constant 0 : i32
    return %c0_i32, %c0_i32_0, %c0_i32_1 : i32, i32, i32
  }
  func.func @transform_4(%arg0: i32, %arg1: i32) -> (i32, i32, i32) {
    %c0_i32 = arith.constant 0 : i32
    %c0_i32_0 = arith.constant 0 : i32
    %c0_i32_1 = arith.constant 0 : i32
    %c0_i32_2 = arith.constant 0 : i32
    return %c0_i32, %c0_i32_0, %c0_i32_1 : i32, i32, i32
  }
  func.func @transform_5(%arg0: i32, %arg1: i32) -> (i32, i32, i32) {
    %c0_i32 = arith.constant 0 : i32
    %c0_i32_0 = arith.constant 0 : i32
    %c0_i32_1 = arith.constant 0 : i32
    %c0_i32_2 = arith.constant 0 : i32
    return %c0_i32, %c0_i32_0, %c0_i32_1 : i32, i32, i32
  }
  func.func @transform_6(%arg0: i32, %arg1: i32) -> (i32, i32, i32) {
    %c0_i32 = arith.constant 0 : i32
    %c0_i32_0 = arith.constant 0 : i32
    %c0_i32_1 = arith.constant 0 : i32
    %c0_i32_2 = arith.constant 0 : i32
    return %c0_i32, %c0_i32_0, %c0_i32_1 : i32, i32, i32
  }
  func.func @transform_7(%arg0: i32, %arg1: i32) -> (i32, i32, i32, i32) {
    %c0_i32 = arith.constant 0 : i32
    %c0_i32_0 = arith.constant 0 : i32
    %c0_i32_1 = arith.constant 0 : i32
    return %arg0, %c0_i32, %arg1, %c0_i32_0 : i32, i32, i32, i32
  }
  func.func @transform_8(%arg0: i32, %arg1: i32) -> (i32, i32, i32, i32) {
    %c0_i32 = arith.constant 0 : i32
    %c0_i32_0 = arith.constant 0 : i32
    %c0_i32_1 = arith.constant 0 : i32
    return %arg0, %c0_i32, %arg1, %c0_i32_0 : i32, i32, i32, i32
  }
  func.func @transform_9(%arg0: i32, %arg1: i32) -> (i32, i32, i32, i32) {
    %c0_i32 = arith.constant 0 : i32
    %c0_i32_0 = arith.constant 0 : i32
    %c0_i32_1 = arith.constant 0 : i32
    return %arg0, %c0_i32, %arg1, %c0_i32_0 : i32, i32, i32, i32
  }
}

</mosaic_0001>

<bundles_post_ra>
// kernel: tpu_custom_call.1
= control target key start
LH: loop header
LB: loop body
LE: loop exit
PB: predicated region body
PF: predicated region fallthrough
CT: control target
= control target key end

     0   :  { %s2717_s0 = inlined_call_operand.vmem [shape: f32[2,8,32], index: 0, kind: input, shape index: {}]   ;;  %s2718_s1 = inlined_call_operand.vmem [shape: f32[4,32,8], index: 1, kind: input, shape index: {}]   ;;  %s2719_s2 = inlined_call_operand.vmem [shape: f32[4,32,8], index: 2, kind: input, shape index: {}]   ;;  %s2720_s3 = inlined_call_operand.vmem [shape: f32[4,32,8], index: 3, kind: input, shape index: {}]   ;;  %s2721_s4 = inlined_call_operand.vmem [shape: f32[4,1,8], index: 4, kind: input, shape index: {}]   ;;  %s2722_s5 = inlined_call_operand.vmem [shape: f32[4,1,8], index: 5, kind: input, shape index: {}]   ;;  %s2723_s6 = inlined_call_operand.vmem [shape: f32[4,1,8], index: 6, kind: input, shape index: {}]   ;;  %s2724_s7 = inlined_call_operand.hbm [shape: f32[2,4,8,8], index: 7, kind: output, shape index: {0}]   ;;  %s2725_s8 = inlined_call_operand.hbm [shape: f32[2,4,8,8], index: 8, kind: output, shape index: {1}]   ;;  %s2726_s9 = inlined_call_operand.hbm [shape: f32[2,4,8,8], index: 9, kind: output, shape index: {2}]  }
   0x1   :  { %2732 = sst [smem:[#allocation10_spill]] %s2717_s0 }
   0x2   :  { %2733 = sst [smem:[#allocation11_spill]] %s2718_s1 }
   0x3   :  { %2734 = sst [smem:[#allocation12_spill]] %s2719_s2 }
   0x4   :  { %15 = vsyncpa [#allocation3], 0 }
   0x5   :  { %17 = vsyncpa [#allocation3 + $0x1], 0 }
   0x6   :  { %18 = vsyncpa [#allocation5], 0 }
   0x7   :  { %20 = vsyncpa [#allocation5 + $0x1], 0  ;;  %s2224_s30 = smov 0   ;;  %s2226_s10 = smov 0  }
   0x8   :  { %s2228_s11 = smov 0   ;;  %s2230_s12 = smov 0  }
   0x9   :  { %s2232_s13 = smov 0   ;;  %s2234_s14 = smov 0  }
   0xa LB: > { %s2728_s15 = sadd.s32 4294967295, %s2164_s14   ;;  %s2727_s16 = sadd.s32 4294967294, %s2164_s14   ;;  %s2164_s14 = sphi %s2234_s14, %s26_s14   ;;  %s2160_s13 = sphi %s2232_s13, %s2750_s13   ;;  %s2156_s12 = sphi %s2230_s12, %s2749_s12   ;;  %s2152_s11 = sphi %s2228_s11, %s2748_s11   ;;  %s2148_s10 = sphi %s2226_s10, %s2747_s10   ;;  %s2144_s30 = sphi %s2224_s30, %s2746_s30  }
   0xb   : > { %s38_s17 = sadd.s32 1, %s2160_s13  ;;  %s201_s18 = sadd.s32 1, %s2152_s11 }
   0xc   : > { %p40_p0 = scmp.ge.s32.totalorder %s38_s17, 2  ;;  %p211_p1 = scmp.ne.s32.totalorder %s2152_s11, %s2148_s10 }
   0xd   : > { %p212_p2 = scmp.eq.s32.totalorder %s2728_s15, 1  ;;  %p217_p3 = scmp.ne.s32.totalorder %s2148_s10, %s2144_s30 }
   0xe   : > { %s2752_s17 = smov (%p40_p0, %s38_s17), 0  ;;  %p218_p5 = scmp.eq.s32.totalorder %s2727_s16, 1 }
   0xf   : > { %2735 = sst [smem:[#allocation9_spill]] %s2752_s17  ;;  %p2266_p4 = por %p212_p2, %p211_p1 }
  0x10   : > { %s196_s20 = ssub.s32 %s2160_s13, %s2752_s17  ;;  %p1595_p6 = scmp.ge.s32.totalorder %s2164_s14, 1 }
  0x11   : > { %p199_p7 = scmp.eq.s32.totalorder %s196_s20, 0  ;;  %p2275_p8 = por %p218_p5, %p217_p3 }
  0x12   : > { %p320_p9 = scmp.lt.s32.totalorder %s2164_s14, 3 }
  0x13   : > { %s2281_s22 = scalar_select %p199_p7, %s2152_s11, %s201_s18  }
  0x14   : > { %p321_p10 = pnand %p1595_p6, %p320_p9 }
  0x15   : > { %s2738_s1 = sld [smem:[#allocation11_spill]] (!%p321_p10)  ;;  %s2739_s2 = sld [smem:[#allocation12_spill]] (!%p321_p10)  ;;  %v2166_v3 = vmov (!%p321_p10), 0.0|0.0   ;;  %vm2167_vm0 = vmmov (!%p321_p10), 0   ;;  %v2168_v11 = vmov (!%p321_p10), 0.0   ;;  %v542_v14 = vld [vmem:[%s2720_s3] sm:$0xff] (!%p321_p10) }
  0x16   : > { %324 = sbr.rel (%p321_p10) target bundleno = 348 (0x15c), region = 48  ;;  %1884 = vmatprep.subr.bf16.mxu0 (!%p321_p10), %v2166_v3  ;;  %1890 = vmatprep.subr.bf16.mxu1 (!%p321_p10), %v2166_v3  ;;  %p368_p11 = scmp.lt.s32.totalorder (!%p321_p10), %s2156_s12, 1  ;;  %v543_v15 = vld [vmem:[%s2720_s3 + $0x8] sm:$0xff] (!%p321_p10)  ;;  %vm387_vm1 = vcmask (!%p321_p10), 261120   ;;  %v544_v21 = vld [vmem:[%s2720_s3 + $0x10] sm:$0xff] (!%p321_p10)  ;;  %v545_v22 = vld [vmem:[%s2720_s3 + $0x18] sm:$0xff] (!%p321_p10) }
  0x17   : > { %1760 = vmatprep.mubr.msk.f32.mxu0 (!%p321_p10), %vm2167_vm0, %v2168_v11  ;;  %1771 = vmatprep.mubr.msk.f32.mxu1 (!%p321_p10), %vm2167_vm0, %v2168_v11  ;;  %s2740_s0 = sld [smem:[#allocation10_spill]] (!%p321_p10)  ;;  %v1897_v19 = vpack.c.bf16 (!%p321_p10), %v543_v15, %v542_v14  ;;  %v1900_v25 = vpack.c.bf16 (!%p321_p10), %v545_v22, %v544_v21  ;;  %v1620_v29 = vld [vmem:[%s2720_s3 + $0x20] sm:$0xff] (!%p321_p10)  ;;  %v1621_v30 = vld [vmem:[%s2720_s3 + $0x28] sm:$0xff] (!%p321_p10)  ;;  %v1622_v35 = vld [vmem:[%s2720_s3 + $0x30] sm:$0xff] (!%p321_p10)  ;;  %vm623_vm2 = vcmask (!%p321_p10), 64512   ;;  %s2563_s27 = sshll.u32 (!%p321_p10), %s2156_s12, 9 }
  0x18   : > { %v1915_v32 = vpack.c.bf16 (!%p321_p10), %v1621_v30, %v1620_v29  ;;  %v1623_v36 = vld [vmem:[%s2720_s3 + $0x38] sm:$0xff] (!%p321_p10)  ;;  %v1644_v51 = vld [vmem:[%s2720_s3 + $0x40] sm:$0xff] (!%p321_p10)  ;;  %v1645_v52 = vld [vmem:[%s2720_s3 + $0x48] sm:$0xff] (!%p321_p10)  ;;  %s2571_s15 = scalar_lea.hbm (!%p321_p10), %s2724_s7, %s2563_s27 }
  0x19   : > { %v1918_v38 = vpack.c.bf16 (!%p321_p10), %v1623_v36, %v1622_v35  ;;  %v1933_v55 = vpack.c.bf16 (!%p321_p10), %v1645_v52, %v1644_v51  ;;  %v1646_v57 = vld [vmem:[%s2720_s3 + $0x50] sm:$0xff] (!%p321_p10)  ;;  %v1647_v58 = vld [vmem:[%s2720_s3 + $0x58] sm:$0xff] (!%p321_p10)  ;;  %v1635_v35 = vld [vmem:[%s2721_s4 + $0x2] ss:$0 sm:$0xff] (!%p321_p10) }
  0x1a   : > { %v1936_v61 = vpack.c.bf16 (!%p321_p10), %v1647_v58, %v1646_v57  ;;  %v1642_v36 = vld [vmem:[%s2722_s5 + $0x2] ss:$0 sm:$0xff] (!%p321_p10) }
  0x1b   : > { %v376_v0 = vld [vmem:[%s2738_s1] sm:$0xff] (!%p321_p10)  ;;  %v377_v1 = vld [vmem:[%s2738_s1 + $0x8] sm:$0xff] (!%p321_p10)  ;;  %v378_v6 = vld [vmem:[%s2738_s1 + $0x10] sm:$0xff] (!%p321_p10) }
  0x1c   : > { %v461_v2 = vld [vmem:[%s2739_s2] sm:$0xff] (!%p321_p10)  ;;  %v1885_v4 = vpack.c.bf16 (!%p321_p10), %v377_v1, %v376_v0  ;;  %v462_v5 = vld [vmem:[%s2739_s2 + $0x8] sm:$0xff] (!%p321_p10)  ;;  %v379_v7 = vld [vmem:[%s2738_s1 + $0x18] sm:$0xff] (!%p321_p10) }
  0x1d   : > { %v1891_v8 = vpack.c.bf16 %v462_v5, %v461_v2  ;;  %v463_v9 = vld [vmem:[%s2739_s2 + $0x10] sm:$0xff]  ;;  %v464_v10 = vld [vmem:[%s2739_s2 + $0x18] sm:$0xff]  ;;  %v1888_v12 = vpack.c.bf16 %v379_v7, %v378_v6  ;;  %s369_s29 = scalar_select %p368_p11, %s2156_s12, 1  ;;  %v1606_v16 = vld [vmem:[%s2738_s1 + $0x20] sm:$0xff] }
  0x1e   : > { %1886 = vmatpush3.bf16.msra.mxu0 %v1885_v4  ;;  %v1894_v13 = vpack.c.bf16 %v464_v10, %v463_v9  ;;  %v1607_v17 = vld [vmem:[%s2738_s1 + $0x28] sm:$0xff]  ;;  %v1608_v23 = vld [vmem:[%s2738_s1 + $0x30] sm:$0xff]  ;;  %v1609_v24 = vld [vmem:[%s2738_s1 + $0x38] sm:$0xff] }
  0x1f   : > { %1892 = vmatpush3.bf16.msra.mxu1 %v1891_v8  ;;  %1887 = vmatprep.subr.bf16.mxu0 %v2166_v3  ;;  %s1599_s24 = sshll.u32 %s369_s29, 3  ;;  %v1903_v20 = vpack.c.bf16 %v1607_v17, %v1606_v16  ;;  %v1906_v26 = vpack.c.bf16 %v1609_v24, %v1608_v23  ;;  %v1613_v27 = vld [vmem:[%s2739_s2 + $0x20] sm:$0xff]  ;;  %v1614_v28 = vld [vmem:[%s2739_s2 + $0x28] sm:$0xff]  ;;  %v1615_v33 = vld [vmem:[%s2739_s2 + $0x30] sm:$0xff]  ;;  %s351_s29 = sand.u32 1, %s2148_s10  }
  0x20   : > { %1893 = vmatprep.subr.bf16.mxu1 %v2166_v3  ;;  %s374_s18 = scalar_lea.vmem %s2740_s0, %s1599_s24  ;;  %v1909_v31 = vpack.c.bf16 %v1614_v28, %v1613_v27  ;;  %v1616_v34 = vld [vmem:[%s2739_s2 + $0x38] sm:$0xff]  ;;  %v1630_v39 = vld [vmem:[%s2738_s1 + $0x40] sm:$0xff]  ;;  %v1631_v40 = vld [vmem:[%s2738_s1 + $0x48] sm:$0xff]  ;;  %s1596_s20 = sshll.u32 %s351_s29, 5 }
  0x21   : > { %v2332_v18 = vld [vmem:[%s374_s18] sm:$0xff]  ;;  %v1912_v37 = vpack.c.bf16 %v1616_v34, %v1615_v33  ;;  %v1638_v42 = vld [vmem:[%s2739_s2 + $0x48] sm:$0xff]  ;;  %v1921_v43 = vpack.c.bf16 %v1631_v40, %v1630_v39  ;;  %v1632_v45 = vld [vmem:[%s2738_s1 + $0x50] sm:$0xff]  ;;  %s2515_s24 = scalar_lea.vmem [#allocation2], %s1596_s20  ;;  %s2519_s25 = scalar_lea.vmem [#allocation4], %s1596_s20 }
  0x22   : > { %1889 = vmatpush3.bf16.msra.mxu0 %v1888_v12  ;;  %v1637_v41 = vld [vmem:[%s2739_s2 + $0x40] sm:$0xff]  ;;  %v1633_v46 = vld [vmem:[%s2738_s1 + $0x58] sm:$0xff]  ;;  %v1639_v47 = vld [vmem:[%s2739_s2 + $0x50] sm:$0xff]  ;;  %s2529_s16 = scalar_lea.vmem [#allocation6], %s1596_s20  ;;  %s1417_s23 = sshll.u32 %s2515_s24, 4  ;;  %s2565_s23 = int_to_ptr.vmem [resolvable:$true] %s1417_s23 }
  0x23   : > { %1895 = vmatpush3.bf16.msra.mxu1 %v1894_v13  ;;  %1896 = vmatprep.subr.bf16.mxu0 %v2166_v3  ;;  %v1927_v44 = vpack.c.bf16 %v1638_v42, %v1637_v41  ;;  %v1640_v48 = vld [vmem:[%s2739_s2 + $0x58] sm:$0xff]  ;;  %v1924_v49 = vpack.c.bf16 %v1633_v46, %v1632_v45  ;;  %v1654_v53 = vld [vmem:[%s2738_s1 + $0x60] sm:$0xff]  ;;  %v1655_v54 = vld [vmem:[%s2738_s1 + $0x68] sm:$0xff]  ;;  %s2580_s17 = scalar_lea.sflag [#allocation3], %s351_s29  ;;  %s2026_s26 = scalar_lea.vmem %s2565_s23, 512 }
  0x24   : > { %1902 = vmatprep.subr.bf16.mxu1 %v2166_v3  ;;  %v1930_v50 = vpack.c.bf16 %v1640_v48, %v1639_v47  ;;  %v1939_v56 = vpack.c.bf16 %v1655_v54, %v1654_v53  ;;  %v1656_v59 = vld [vmem:[%s2738_s1 + $0x70] sm:$0xff]  ;;  %v1657_v60 = vld [vmem:[%s2738_s1 + $0x78] sm:$0xff]  ;;  %v1661_v63 = vld [vmem:[%s2739_s2 + $0x60] sm:$0xff]  ;;  %p2027_p12 = scmp.ne.s32.totalorder %s2565_s23, %s2026_s26  ;;  %s2169_s20 = smov [#allocation2]  }
  0x25   : > { %1761 = vmatmul.mubr.msk.f32.vlgmr.msra.gmra.mrb[0].mxu0 %vm387_vm1, %v2332_v18  ;;  %v1942_v62 = vpack.c.bf16 %v1657_v60, %v1656_v59  ;;  %v1662_v0 = vld [vmem:[%s2739_s2 + $0x68] sm:$0xff]  ;;  %v1668_v1 = vld [vmem:[%s2720_s3 + $0x60] sm:$0xff]  ;;  %v1663_v6 = vld [vmem:[%s2739_s2 + $0x70] sm:$0xff]  ;;  %s2030_s0 = sshll.u32 %s2169_s20, 4  ;;  %s2031_s0 = int_to_ptr.vmem [resolvable:$false] %s2030_s0 }
  0x26   : > { %1772 = vmatmul.mubr.msk.f32.vlgmr.msra.gmra.mrb[0].mxu1 %vm387_vm1, %v2332_v18  ;;  %1898 = vmatpush3.bf16.msra.mxu0 %v1897_v19  ;;  %v1669_v2 = vld [vmem:[%s2720_s3 + $0x68] sm:$0xff]  ;;  %v1945_v4 = vpack.c.bf16 %v1662_v0, %v1661_v63  ;;  %v1664_v7 = vld [vmem:[%s2739_s2 + $0x78] sm:$0xff]  ;;  %v1670_v8 = vld [vmem:[%s2720_s3 + $0x70] sm:$0xff]  ;;  %p2028_p13 = pnand %p2027_p12, %p2266_p4  ;;  %s2032_s1 = scalar_lea.vmem %s2031_s0, 1024 }
  0x27   : > { %1904 = vmatpush3.bf16.msra.mxu1 %v1903_v20  ;;  %1899 = vmatprep.subr.bf16.mxu0 %v2166_v3  ;;  %v1951_v5 = vpack.c.bf16 %v1669_v2, %v1668_v1  ;;  %v1671_v9 = vld [vmem:[%s2720_s3 + $0x78] sm:$0xff]  ;;  %v1948_v10 = vpack.c.bf16 %v1664_v7, %v1663_v6  ;;  %v1602_v13 = vld [vmem:[%s2722_s5] ss:$0 sm:$0xff]  ;;  %v1611_v20 = vld [vmem:[%s2721_s4 + $0x1] ss:$0 sm:$0xff]  ;;  %p2033_p1 = scmp.lt.s32.totalorder %s2565_s23, %s2031_s0  ;;  %p2034_p2 = scmp.lt.s32.totalorder %s2032_s1, %s2026_s26 }
  0x28   : > { %1905 = vmatprep.subr.bf16.mxu1 %v2166_v3  ;;  %1782 = vmatprep.mubr.msk.f32.mxu0 %vm2167_vm0, %v2168_v11  ;;  %v1954_v12 = vpack.c.bf16 %v1671_v9, %v1670_v8  ;;  %v1618_v27 = vld [vmem:[%s2722_s5 + $0x1] ss:$0 sm:$0xff]  ;;  %p2029_p0 = pneg %p2028_p13 }
  0x29   : > { %1793 = vmatprep.mubr.msk.f32.mxu1 %vm2167_vm0, %v2168_v11  ;;  %v1625_v28 = vld [vmem:[%s2723_s6 + $0x1] ss:$0 sm:$0xff]  ;;  %p2035_p3 = por %p2034_p2, %p2033_p1 }
  0x2a   : > { %1901 = vmatpush3.bf16.msra.mxu0 %v1900_v25 }
  0x2b   : > { %1907 = vmatpush3.bf16.msra.mxu1 %v1906_v26  ;;  %1908 = vmatprep.subr.bf16.mxu0 %v2166_v3  ;;  %p2036_p5 = pnand %p2035_p3, %p2029_p0 }
  0x2c   : > { %1914 = vmatprep.subr.bf16.mxu1 %v2166_v3 }
  0x2d   : > { %1783 = vmatmul.mubr.msk.f32.vlgmr.msra.gmra.mrb[2].mxu0 %vm387_vm1, %v2332_v18 }
  0x2e   : > { %1794 = vmatmul.mubr.msk.f32.vlgmr.msra.gmra.mrb[2].mxu1 %vm387_vm1, %v2332_v18  ;;  %1910 = vmatpush3.bf16.msra.mxu0 %v1909_v31 }
  0x2f   : > { %1916 = vmatpush3.bf16.msra.mxu1 %v1915_v32  ;;  %1911 = vmatprep.subr.bf16.mxu0 %v2166_v3 }
  0x30   : > { %1917 = vmatprep.subr.bf16.mxu1 %v2166_v3  ;;  %1804 = vmatprep.mubr.msk.f32.mxu0 %vm2167_vm0, %v2168_v11 }
  0x31   : > { %1815 = vmatprep.mubr.msk.f32.mxu1 %vm2167_vm0, %v2168_v11 }
  0x32   : > { %1913 = vmatpush3.bf16.msra.mxu0 %v1912_v37 }
  0x33   : > { %1919 = vmatpush3.bf16.msra.mxu1 %v1918_v38  ;;  %1920 = vmatprep.subr.bf16.mxu0 %v2166_v3 }
  0x34   : > { %1926 = vmatprep.subr.bf16.mxu1 %v2166_v3 }
  0x35   : > { %1805 = vmatmul.mubr.msk.f32.vlgmr.msra.gmra.mrb[4].mxu0 %vm387_vm1, %v2332_v18 }
  0x36   : > { %1816 = vmatmul.mubr.msk.f32.vlgmr.msra.gmra.mrb[4].mxu1 %vm387_vm1, %v2332_v18  ;;  %1922 = vmatpush3.bf16.msra.mxu0 %v1921_v43  ;;  %v1649_v43 = vld [vmem:[%s2723_s6 + $0x2] ss:$0 sm:$0xff] }
  0x37   : > { %1928 = vmatpush3.bf16.msra.mxu1 %v1927_v44  ;;  %1923 = vmatprep.subr.bf16.mxu0 %v2166_v3  ;;  %v1659_v44 = vld [vmem:[%s2721_s4 + $0x3] ss:$0 sm:$0xff] }
  0x38   : > { %1929 = vmatprep.subr.bf16.mxu1 %v2166_v3  ;;  %1826 = vmatprep.mubr.msk.f32.mxu0 %vm2167_vm0, %v2168_v11 }
  0x39   : > { %1837 = vmatprep.mubr.msk.f32.mxu1 %vm2167_vm0, %v2168_v11 }
  0x3a   : > { %1925 = vmatpush3.bf16.msra.mxu0 %v1924_v49 }
  0x3b   : > { %1931 = vmatpush3.bf16.msra.mxu1 %v1930_v50  ;;  %1932 = vmatprep.subr.bf16.mxu0 %v2166_v3 }
  0x3c   : > { %1938 = vmatprep.subr.bf16.mxu1 %v2166_v3 }
  0x3d   : > { %1827 = vmatmul.mubr.msk.f32.vlgmr.msra.gmra.mrb[6].mxu0 %vm387_vm1, %v2332_v18 }
  0x3e   : > { %1838 = vmatmul.mubr.msk.f32.vlgmr.msra.gmra.mrb[6].mxu1 %vm387_vm1, %v2332_v18  ;;  %1934 = vmatpush3.bf16.msra.mxu0 %v1933_v55 }
  0x3f   : > { %1940 = vmatpush3.bf16.msra.mxu1 %v1939_v56  ;;  %1935 = vmatprep.subr.bf16.mxu0 %v2166_v3 }
  0x40   : > { %1941 = vmatprep.subr.bf16.mxu1 %v2166_v3  ;;  %1848 = vmatprep.mubr.msk.f32.mxu0 %vm2167_vm0, %v2168_v11 }
  0x41   : > { %1859 = vmatprep.mubr.msk.f32.mxu1 %vm2167_vm0, %v2168_v11 }
  0x42   : > { %1937 = vmatpush3.bf16.msra.mxu0 %v1936_v61 }
  0x43   : > { %1943 = vmatpush3.bf16.msra.mxu1 %v1942_v62  ;;  %1944 = vmatprep.subr.bf16.mxu0 %v2166_v3 }
  0x44   : > { %1950 = vmatprep.subr.bf16.mxu1 %v2166_v3 }
  0x45   : > { %1849 = vmatmul.mubr.msk.f32.vlgmr.msra.gmra.mrb[8].mxu0 %vm387_vm1, %v2332_v18 }
  0x46   : > { %1860 = vmatmul.mubr.msk.f32.vlgmr.msra.gmra.mrb[8].mxu1 %vm387_vm1, %v2332_v18  ;;  %1946 = vmatpush3.bf16.msra.mxu0 %v1945_v4 }
  0x47   : > { %1952 = vmatpush3.bf16.msra.mxu1 %v1951_v5  ;;  %1947 = vmatprep.subr.bf16.mxu0 %v2166_v3 }
  0x48   : > { %1953 = vmatprep.subr.bf16.mxu1 %v2166_v3  ;;  %1870 = vmatprep.mubr.msk.f32.mxu0 %vm2167_vm0, %v2168_v11  ;;  %v1600_v3 = vld [vmem:[%s2721_s4] ss:$0 sm:$0xff] }
  0x49   : > { %1881 = vmatprep.mubr.msk.f32.mxu1 %vm2167_vm0, %v2168_v11 }
  0x4a   : > { %1949 = vmatpush3.bf16.msra.mxu0 %v1948_v10 }
  0x4b   : > { %1955 = vmatpush3.bf16.msra.mxu1 %v1954_v12 }
  0x4d   : > { %1871 = vmatmul.mubr.msk.f32.vlgmr.msra.gmra.mrb[10].mxu0 %vm387_vm1, %v2332_v18 }
  0x4e   : > { %1882 = vmatmul.mubr.msk.f32.vlgmr.msra.gmra.mrb[10].mxu1 %vm387_vm1, %v2332_v18  ;;  %v1604_v18 = vld [vmem:[%s2723_s6] ss:$0 sm:$0xff] }
  0xf8   : > { %v457_v11 = vpop.f32.mrb[0].mxu0 }
  0xf9   : > { %v458_v14 = vadd.f32 %v1600_v3, %v457_v11  ;;  %v1762_v15 = vpop.f32.mrb[1].mxu0  ;;  %v538_v16 = vpop.f32.mrb[0].mxu1 }
  0xfa   : > { %v539_v17 = vadd.f32 %v1602_v13, %v538_v16  ;;  %v1773_v19 = vpop.f32.mrb[1].mxu1 }
  0xfb   : > { %624 = vst.msk [vmem:[%s2515_s24] sm:$0xff] %vm623_vm2, %v458_v14 }
  0xfc   : > { %625 = vst.msk [vmem:[%s2519_s25] sm:$0xff] %vm623_vm2, %v539_v17 }
 0x100   : > { %v619_v21 = vpop.f32.mrb[2].mxu0 }
 0x101   : > { %v620_v22 = vadd.f32 %v1604_v18, %v619_v21  ;;  %v1784_v23 = vpop.f32.mrb[3].mxu0  ;;  %v706_v24 = vpop.f32.mrb[2].mxu1 }
 0x102   : > { %v707_v25 = vadd.f32 %v1611_v20, %v706_v24  ;;  %v1795_v26 = vpop.f32.mrb[3].mxu1 }
 0x103   : > { %626 = vst.msk [vmem:[%s2529_s16] sm:$0xff] %vm623_vm2, %v620_v22 }
 0x104   : > { %1627 = vst.msk [vmem:[%s2515_s24 + $0x8] sm:$0xff] %vm623_vm2, %v707_v25 }
 0x108   : > { %v789_v29 = vpop.f32.mrb[4].mxu0 }
 0x109   : > { %v790_v30 = vadd.f32 %v1618_v27, %v789_v29  ;;  %v1806_v31 = vpop.f32.mrb[5].mxu0  ;;  %v872_v32 = vpop.f32.mrb[4].mxu1 }
 0x10a   : > { %v873_v33 = vadd.f32 %v1625_v28, %v872_v32  ;;  %v1817_v34 = vpop.f32.mrb[5].mxu1 }
 0x10b   : > { %1628 = vst.msk [vmem:[%s2519_s25 + $0x8] sm:$0xff] %vm623_vm2, %v790_v30 }
 0x10c   : > { %1629 = vst.msk [vmem:[%s2529_s16 + $0x8] sm:$0xff] %vm623_vm2, %v873_v33 }
 0x110   : > { %v961_v37 = vpop.f32.mrb[6].mxu0 }
 0x111   : > { %v962_v38 = vadd.f32 %v1635_v35, %v961_v37  ;;  %v1828_v39 = vpop.f32.mrb[7].mxu0  ;;  %v1044_v40 = vpop.f32.mrb[6].mxu1 }
 0x112   : > { %v1045_v41 = vadd.f32 %v1642_v36, %v1044_v40  ;;  %v1839_v42 = vpop.f32.mrb[7].mxu1 }
 0x113   : > { %1651 = vst.msk [vmem:[%s2515_s24 + $0x10] sm:$0xff] %vm623_vm2, %v962_v38 }
 0x114   : > { %1652 = vst.msk [vmem:[%s2519_s25 + $0x10] sm:$0xff] %vm623_vm2, %v1045_v41 }
 0x118   : > { %v1127_v45 = vpop.f32.mrb[8].mxu0 }
 0x119   : > { %v1128_v46 = vadd.f32 %v1649_v43, %v1127_v45  ;;  %v1850_v47 = vpop.f32.mrb[9].mxu0  ;;  %v1216_v48 = vpop.f32.mrb[8].mxu1 }
 0x11a   : > { %v1217_v49 = vadd.f32 %v1659_v44, %v1216_v48  ;;  %v1861_v50 = vpop.f32.mrb[9].mxu1 }
 0x11b   : > { %1653 = vst.msk [vmem:[%s2529_s16 + $0x10] sm:$0xff] %vm623_vm2, %v1128_v46 }
 0x11c   : > { %1675 = vst.msk [vmem:[%s2515_s24 + $0x18] sm:$0xff] %vm623_vm2, %v1217_v49 }
 0x11d   : > { %2039 = shalt.err (!%p2036_p5)
}
 0x11e   : > { %s2040_s29 = scalar_lea.hbm %s2571_s15, 512  ;;  %s2044_s18 = scalar_lea.hbm %s2724_s7, 1024 }
 0x11f   : > { %p2041_p6 = scmp.ne.s32.totalorder %s2571_s15, %s2040_s29  ;;  %p2045_p10 = scmp.lt.u32.totalorder %s2571_s15, %s2724_s7 }
 0x120   : > { %p2046_p11 = scmp.lt.u32.totalorder %s2044_s18, %s2040_s29  ;;  %p2048_p13 = scmp.lt.u32.totalorder %s2040_s29, %s2571_s15 }
 0x121   : > { %p2042_p7 = pnand %p2041_p6, %p2266_p4 }
 0x122   : > { %p2047_p12 = por %p2046_p11, %p2045_p10 }
 0x123   : > { %p2043_p9 = pneg %p2042_p7 }
 0x124   : > { %p2049_p0 = por %p2048_p13, %p2047_p12 }
 0x126   : > { %p2050_p1 = pnand %p2049_p0, %p2043_p9 }
 0x128   : > { %2053 = shalt.err (!%p2050_p1)
}
 0x129   : > { %s2730_s1 = smov 128   ;;  %s2171_s26 = smov 8   ;;  %v1666_v51 = vld [vmem:[%s2722_s5 + $0x3] ss:$0 sm:$0xff]  ;;  %v1299_v53 = vpop.f32.mrb[10].mxu0  ;;  %v1382_v55 = vpop.f32.mrb[10].mxu1 }
 0x12a   : > { %1956 = dma.vmem_to_hbm [thread:$0]  (%p2266_p4), %s2565_s23, 512, %s2571_s15, %s2580_s17, %s2730_s1, %s2730_s1, %s2171_s26   ;;  %v1300_v54 = vadd.f32 %v1666_v51, %v1299_v53  ;;  %v1872_v56 = vpop.f32.mrb[11].mxu0  ;;  %v1883_v58 = vpop.f32.mrb[11].mxu1 }
 0x12b   : > { %s2741_s28 = sadd.s32 4294967295, %s2164_s14   ;;  %s1451_s20 = sshll.u32 %s2529_s16, 4  ;;  %v1673_v52 = vld [vmem:[%s2723_s6 + $0x3] ss:$0 sm:$0xff]  ;;  %s2628_s20 = int_to_ptr.vmem [resolvable:$true] %s1451_s20 }
 0x12c   : > { %s2612_s18 = sand.u32 1, %s2741_s28   ;;  %s2742_s2 = sshll.u32 %s2519_s25, 4  ;;  %v1383_v57 = vadd.f32 %v1673_v52, %v1382_v55  ;;  %1676 = vst.msk [vmem:[%s2519_s25 + $0x18] sm:$0xff] %vm623_vm2, %v1300_v54  ;;  %s2620_s2 = int_to_ptr.vmem [resolvable:$true] %s2742_s2 }
 0x12d   : > { %s2626_s17 = scalar_lea.hbm %s2725_s8, %s2563_s27  ;;  %s2634_s24 = scalar_lea.hbm %s2726_s9, %s2563_s27 }
 0x12e   : > { %1677 = vst.msk [vmem:[%s2529_s16 + $0x18] sm:$0xff] %vm623_vm2, %v1383_v57  ;;  %s1398_s28 = scalar_lea.sflag [#allocation5], %s2612_s18  ;;  %s2054_s0 = scalar_lea.vmem %s2620_s2, 512 }
 0x12f   : > { %p2055_p2 = scmp.ne.s32.totalorder %s2620_s2, %s2054_s0  ;;  %s2172_s23 = smov [#allocation4]  }
 0x130   : > { %s2058_s15 = sshll.u32 %s2172_s23, 4  ;;  %s2059_s15 = int_to_ptr.vmem [resolvable:$false] %s2058_s15 }
 0x131   : > { %p2056_p3 = pnand %p2055_p2, %p2266_p4  ;;  %s2060_s1 = scalar_lea.vmem %s2059_s15, 1024 }
 0x132   : > { %p2061_p6 = scmp.lt.s32.totalorder %s2620_s2, %s2059_s15  ;;  %p2062_p7 = scmp.lt.s32.totalorder %s2060_s1, %s2054_s0 }
 0x133   : > { %p2057_p5 = pneg %p2056_p3 }
 0x134   : > { %p2063_p9 = por %p2062_p7, %p2061_p6 }
 0x136   : > { %p2064_p10 = pnand %p2063_p9, %p2057_p5 }
 0x138   : > { %2067 = shalt.err (!%p2064_p10)
}
 0x139   : > { %s2068_s25 = scalar_lea.hbm %s2626_s17, 512  ;;  %s2072_s12 = scalar_lea.hbm %s2725_s8, 1024 }
 0x13a   : > { %p2069_p11 = scmp.ne.s32.totalorder %s2626_s17, %s2068_s25  ;;  %p2073_p0 = scmp.lt.u32.totalorder %s2626_s17, %s2725_s8 }
 0x13b   : > { %p2074_p1 = scmp.lt.u32.totalorder %s2072_s12, %s2068_s25  ;;  %p2076_p3 = scmp.lt.u32.totalorder %s2068_s25, %s2626_s17 }
 0x13c   : > { %p2070_p12 = pnand %p2069_p11, %p2266_p4 }
 0x13d   : > { %p2075_p2 = por %p2074_p1, %p2073_p0 }
 0x13e   : > { %p2071_p13 = pneg %p2070_p12 }
 0x13f   : > { %p2077_p5 = por %p2076_p3, %p2075_p2 }
 0x141   : > { %p2078_p6 = pnand %p2077_p5, %p2071_p13 }
 0x143   : > { %2081 = shalt.err (!%p2078_p6)
}
 0x144   : > { %s2743_s1 = smov 128   ;;  %s2082_s0 = scalar_lea.vmem %s2628_s20, 512 }
 0x145   : > { %1957 = dma.vmem_to_hbm [thread:$0]  (%p2266_p4), %s2620_s2, 512, %s2626_s17, %s1398_s28, %s2743_s1, %s2743_s1, %s2171_s26  }
 0x146   : > { %p2083_p7 = scmp.ne.s32.totalorder %s2628_s20, %s2082_s0  ;;  %s2173_s15 = smov [#allocation6]  }
 0x147   : > { %s2086_s25 = sshll.u32 %s2173_s15, 4  ;;  %s2087_s25 = int_to_ptr.vmem [resolvable:$false] %s2086_s25 }
 0x148   : > { %p2084_p9 = pnand %p2083_p7, %p2266_p4  ;;  %s2088_s16 = scalar_lea.vmem %s2087_s25, 1024 }
 0x149   : > { %p2089_p11 = scmp.lt.s32.totalorder %s2628_s20, %s2087_s25  ;;  %p2090_p12 = scmp.lt.s32.totalorder %s2088_s16, %s2082_s0 }
 0x14a   : > { %p2085_p10 = pneg %p2084_p9 }
 0x14b   : > { %p2091_p13 = por %p2090_p12, %p2089_p11 }
 0x14d   : > { %p2092_p0 = pnand %p2091_p13, %p2085_p10 }
 0x14f   : > { %2095 = shalt.err (!%p2092_p0)
}
 0x150   : > { %s2096_s2 = scalar_lea.hbm %s2634_s24, 512  ;;  %s2100_s12 = scalar_lea.hbm %s2726_s9, 1024 }
 0x151   : > { %p2097_p1 = scmp.ne.s32.totalorder %s2634_s24, %s2096_s2  ;;  %p2101_p5 = scmp.lt.u32.totalorder %s2634_s24, %s2726_s9 }
 0x152   : > { %p2102_p6 = scmp.lt.u32.totalorder %s2100_s12, %s2096_s2  ;;  %p2104_p9 = scmp.lt.u32.totalorder %s2096_s2, %s2634_s24 }
 0x153   : > { %p2098_p2 = pnand %p2097_p1, %p2266_p4 }
 0x154   : > { %p2103_p7 = por %p2102_p6, %p2101_p5 }
 0x155   : > { %p2099_p3 = pneg %p2098_p2 }
 0x156   : > { %p2105_p10 = por %p2104_p9, %p2103_p7 }
 0x158   : > { %p2106_p11 = pnand %p2105_p10, %p2099_p3 }
 0x15a   : > { %2109 = shalt.err (!%p2106_p11)
}
 0x15b   : > { %1958 = dma.vmem_to_hbm [thread:$0]  (%p2266_p4), %s2628_s20, 512, %s2634_s24, %s1398_s28, %s2743_s1, %s2743_s1, %s2171_s26  }
 0x15c PF: > { %p1972_p12 = scmp.ge.s32.totalorder %s2164_s14, 2  ;;  %s1466_s0 = sand.u32 1, %s2144_s30  }
 0x15d   : > { %s1467_s15 = scalar_lea.sflag [#allocation3], %s1466_s0 }
 0x15e   : > { %p1963_p13 = pnand %p1972_p12, %p2275_p8 }
 0x160   : > { %2135 = dma.done.wait (!%p1963_p13), %s1467_s15, 512  }
 0x161   : > { %2137 = vsyncadd (!%p1963_p13), %s1467_s15, 4294966784  ;;  %s2744_s19 = sadd.s32 4294967294, %s2164_s14  }
 0x162   : > { %s1475_s25 = sand.u32 1, %s2744_s19  }
 0x163   : > { %s1476_s16 = scalar_lea.sflag [#allocation5], %s1475_s25 }
 0x164   : > { %2139 = dma.done.wait (!%p1963_p13), %s1476_s16, 1024  }
 0x165   : > { %2141 = vsyncadd (!%p1963_p13), %s1476_s16, 4294966272  ;;  %s26_s14 = sadd.s32 1, %s2164_s14   ;;  %s2745_s26 = sld [smem:[#allocation9_spill]] }
 0x166   : > { %p23_p4 = scmp.ge.s32.totalorder %s26_s14, 4   ;;  %s2746_s30 = smov %s2148_s10 }
 0x167   : > { %s2747_s10 = smov %s2152_s11  ;;  %s2748_s11 = smov %s2281_s22 }
 0x168   : > { %s2749_s12 = smov %s2160_s13  ;;  %25 = sbr.rel (!%p23_p4) target bundleno = 10 (0xa), region = 142 }
 0x16b   : > { %s2750_s13 = smov %s2745_s26 }
 0x16f   :  { %1490 = vsyncpa [#allocation3], 1 }
 0x170   :  { %1492 = vsyncpa [#allocation3 + $0x1], 1 }
 0x171   :  { %1493 = vsyncpa [#allocation5], 1 }
 0x172   :  { %1495 = vsyncpa [#allocation5 + $0x1], 1 }

</bundles_post_ra>
